<compile_context>
chip_gen: v7x
topology: tpu7x:2x2x1
jax: 0.10.0
libtpu: 0.0.40
codegen_flags: <defaults>
</compile_context>

<pallas_src>
import jax
import jax.numpy as jnp
from jax.experimental import pallas as pl
from jax.experimental.pallas import tpu as pltpu

NODE_HIDDEN = 32            # node_hidden_size
NUM_NODES = 8               # g.num_nodes() at this decision step
NUM_DESTS = NUM_NODES - 1   # src = num_nodes - 1, possible_dests = range(src)
LANE = 128                  # TPU lane width
BATCH = 16                  # number of batched decision steps


def choose_dest_kernel(hv_ref, w_ref, b_ref, out_ref):
    D = NUM_DESTS
    hv = hv_ref[...]                      # (B, N, H) f32
    w_all = w_ref[...]                    # (N, H): rows 0..D-1 = w_dest, row D = w_src
    b = b_ref[0]                          # scalar bias from SMEM

    # Single VPU multiply + lane-reduce pass over all nodes: (B, N).
    # Lane d < D holds dot(hv[:, d], w_dest); lane D holds dot(hv[:, src], w_src).
    scores_all = jnp.sum(hv * w_all[None, :, :], axis=-1)

    # dest scores + shared src contribution + bias: (B, D)
    scores = scores_all[:, :D] + scores_all[:, D:D + 1] + b

    # softmax / log_softmax over the dest axis
    m = jnp.max(scores, axis=-1, keepdims=True)
    e = jnp.exp(scores - m)
    s = jnp.sum(e, axis=-1, keepdims=True)
    probs = e / s
    log_sm = scores - m - jnp.log(s)

    # Build the full 128-lane row in registers and issue ONE unmasked store.
    # Lanes [0:D]=probs, [D:2D]=log_softmax, rest = 0 (consumers always slice).
    pad = jnp.zeros((hv.shape[0], LANE - 2 * D), jnp.float32)
    out_ref[...] = jnp.concatenate([probs, log_sm, pad], axis=-1)


def choose_dest_and_update(hv, weight, bias, dest):
    """hv: (B, NUM_NODES, H) f32, weight: (1, 2H) f32, bias: (1,) f32, dest: (B,) int32.

    Returns (probs (B, NUM_DESTS), log_prob (B, 1)) for B batched decision steps.
    """
    B, N, H = hv.shape

    # Merged weight tensor: rows 0..D-1 hit possible_dests_embed, row D hits src_embed.
    w_dest = weight[:, :H]                                        # (1, H)
    w_src = weight[:, H:]                                         # (1, H)
    w_all = jnp.concatenate(
        [jnp.broadcast_to(w_dest, (N - 1, H)), w_src], axis=0)    # (N, H)

    # Single grid step: the whole problem (~16 KiB) fits trivially in VMEM, so any
    # grid tiling only adds fixed per-step overhead (including 2-TC sharding on v7x).
    out = pl.pallas_call(
        choose_dest_kernel,
        in_specs=[
            pl.BlockSpec(memory_space=pltpu.MemorySpace.VMEM),    # hv (full array)
            pl.BlockSpec(memory_space=pltpu.MemorySpace.VMEM),    # w_all (full array)
            pl.BlockSpec(memory_space=pltpu.MemorySpace.SMEM),    # scalar bias
        ],
        out_specs=pl.BlockSpec(memory_space=pltpu.MemorySpace.VMEM),
        out_shape=jax.ShapeDtypeStruct((B, LANE), jnp.float32),
    )(hv, w_all, bias)

    probs = out[:, :NUM_DESTS]
    log_sm = out[:, NUM_DESTS:2 * NUM_DESTS]
    # training-branch gather: log_softmax(scores)[:, dest:dest+1] — free XLA fusion
    log_prob = jnp.take_along_axis(log_sm, dest[:, None], axis=1)
    return probs, log_prob

    # TODO(synk): eval-mode Categorical sampling, g.add_edges / edge-repr init and
    # graph_prop_func(g) are DGL graph side effects with no Pallas equivalent.
    # TODO(synk): real DGMG grows num_nodes per step; batching heterogeneous steps
    # would need per-row dest-count masking (-inf on invalid lanes before softmax).


def reference(hv, weight, bias, dest):
    B = hv.shape[0]
    src = NUM_NODES - 1
    src_expand = jnp.broadcast_to(hv[:, src:src + 1, :], (B, src, NODE_HIDDEN))
    cat = jnp.concatenate([hv[:, :src, :], src_expand], axis=-1)        # (B, src, 2H)
    scores = jnp.einsum("bnk,ok->bn", cat, weight) + bias[0]            # (B, src)
    probs = jax.nn.softmax(scores, axis=-1)
    log_sm = jax.nn.log_softmax(scores, axis=-1)
    log_prob = jnp.take_along_axis(log_sm, dest[:, None], axis=1)
    return probs, log_prob


if __name__ == "__main__":
    key = jax.random.PRNGKey(0)
    k_hv, k_w, k_b, k_d = jax.random.split(key, 4)

    hv = jax.random.normal(k_hv, (BATCH, NUM_NODES, NODE_HIDDEN), jnp.float32)
    # nn.Linear(2*H, 1): weight (1, 2H), bias (1,)
    weight = jax.random.normal(k_w, (1, 2 * NODE_HIDDEN), jnp.float32) * 0.1
    bias = jax.random.normal(k_b, (1,), jnp.float32) * 0.1
    dest = jax.random.randint(k_d, (BATCH,), 0, NUM_DESTS, jnp.int32)

    probs, logp = choose_dest_and_update(hv, weight, bias, dest)
    jax.block_until_ready((probs, logp))

    probs_ref, logp_ref = reference(hv, weight, bias, dest)
    assert jnp.allclose(probs, probs_ref, atol=1e-5, rtol=1e-5), "probs mismatch"
    assert jnp.allclose(logp, logp_ref, atol=1e-5, rtol=1e-5), "log_prob mismatch"

    print("KERNEL_OK")
</pallas_src>

<mosaic_0001>
module attributes {stable_mosaic.version = 11 : i64} {
  func.func @choose_dest_kernel(%arg0: memref<16x8x32xf32, #tpu.memory_space<vmem>>, %arg1: memref<8x32xf32, #tpu.memory_space<vmem>>, %arg2: memref<1xf32, #tpu.memory_space<smem>>, %arg3: memref<16x128xf32, #tpu.memory_space<vmem>>) attributes {dimension_semantics = [], scalar_prefetch = 0 : i64, scratch_operands = 0 : i64, tpu.core_type = #tpu.core_type<tc>} {
    %c0 = arith.constant 0 : index
    %c0_0 = arith.constant 0 : index
    %c0_1 = arith.constant 0 : index
    %0 = vector.load %arg0[%c0, %c0_0, %c0_1] : memref<16x8x32xf32, #tpu.memory_space<vmem>>, vector<16x8x32xf32>
    %c0_2 = arith.constant 0 : index
    %c0_3 = arith.constant 0 : index
    %1 = vector.load %arg1[%c0_2, %c0_3] : memref<8x32xf32, #tpu.memory_space<vmem>>, vector<8x32xf32>
    %c0_4 = arith.constant 0 : index
    %2 = memref.load %arg2[%c0_4] : memref<1xf32, #tpu.memory_space<smem>>
    %3 = vector.shape_cast %1 : vector<8x32xf32> to vector<1x8x32xf32>
    %4 = vector.broadcast %3 : vector<1x8x32xf32> to vector<16x8x32xf32>
    %5 = arith.mulf %0, %4 : vector<16x8x32xf32>
    %cst = arith.constant dense<0.000000e+00> : vector<16x8xf32>
    %6 = vector.multi_reduction <add>, %5, %cst [2] : vector<16x8x32xf32> to vector<16x8xf32>
    %7 = vector.extract_strided_slice %6 {offsets = [0, 0], sizes = [16, 7], strides = [1, 1]} : vector<16x8xf32> to vector<16x7xf32>
    %8 = vector.extract_strided_slice %6 {offsets = [0, 7], sizes = [16, 1], strides = [1, 1]} : vector<16x8xf32> to vector<16x1xf32>
    %9 = vector.broadcast %8 : vector<16x1xf32> to vector<16x7xf32>
    %10 = arith.addf %7, %9 : vector<16x7xf32>
    %11 = vector.broadcast %2 : f32 to vector<16x7xf32>
    %12 = arith.addf %10, %11 : vector<16x7xf32>
    %cst_5 = arith.constant dense<0xFF800000> : vector<16xf32>
    %13 = vector.multi_reduction <maximumf>, %12, %cst_5 [1] : vector<16x7xf32> to vector<16xf32>
    %14 = vector.shape_cast %13 : vector<16xf32> to vector<16x1xf32>
    %15 = vector.broadcast %14 : vector<16x1xf32> to vector<16x7xf32>
    %16 = arith.subf %12, %15 : vector<16x7xf32>
    %17 = math.exp %16 : vector<16x7xf32>
    %cst_6 = arith.constant dense<0.000000e+00> : vector<16xf32>
    %18 = vector.multi_reduction <add>, %17, %cst_6 [1] : vector<16x7xf32> to vector<16xf32>
    %19 = vector.shape_cast %18 : vector<16xf32> to vector<16x1xf32>
    %20 = vector.broadcast %19 : vector<16x1xf32> to vector<16x7xf32>
    %21 = arith.divf %17, %20 : vector<16x7xf32>
    %22 = vector.broadcast %14 : vector<16x1xf32> to vector<16x7xf32>
    %23 = arith.subf %12, %22 : vector<16x7xf32>
    %24 = math.log %19 : vector<16x1xf32>
    %25 = vector.broadcast %24 : vector<16x1xf32> to vector<16x7xf32>
    %26 = arith.subf %23, %25 : vector<16x7xf32>
    %cst_7 = arith.constant 0.000000e+00 : f32
    %27 = vector.broadcast %cst_7 : f32 to vector<16x114xf32>
    %28 = tpu.concatenate %21, %26, %27 in 1 : vector<16x7xf32>, vector<16x7xf32>, vector<16x114xf32> -> vector<16x128xf32>
    %c0_8 = arith.constant 0 : index
    %c0_9 = arith.constant 0 : index
    %29 = vector.load %arg3[%c0_8, %c0_9] : memref<16x128xf32, #tpu.memory_space<vmem>>, vector<16x128xf32>
    tpu.vector_store %arg3[%c0_8, %c0_9], %28 {strides = array<i32>} : memref<16x128xf32, #tpu.memory_space<vmem>>, vector<16x128xf32>,
    return
  }
}

</mosaic_0001>

<bundles_post_ra>
// kernel: tpu_custom_call.1
= control target key start
LH: loop header
LB: loop body
LE: loop exit
PB: predicated region body
PF: predicated region fallthrough
CT: control target
= control target key end

     0   :  { %9 = vsyncpa [#allocation4], 0  ;;  %s1818_s0 = inlined_call_operand.hbm [shape: f32[16,8,32], index: 0, kind: input, shape index: {}]   ;;  %s1819_s1 = inlined_call_operand.hbm [shape: f32[8,32], index: 1, kind: input, shape index: {}]   ;;  %s1820_s2 = inlined_call_operand.<no memory space> [shape: f32[1], index: 2, kind: input, shape index: {}]   ;;  %s1821_s3 = inlined_call_operand.hbm [shape: f32[16,128], index: 3, kind: output, shape index: {}]  }
   0x1   :  { %10 = vsyncpa [#allocation7], 0 }
   0x2   :  { %11 = vsyncpa [#allocation5], 0  ;;  %s1292_s12 = smov [#allocation3]   ;;  %s1220_s16 = scalar_lea.hbm %s1818_s0, 2048 }
   0x3   :  { %s17_s13 = sshll.u32 %s1292_s12, 4  ;;  %p1221_p0 = scmp.ne.s32.totalorder %s1818_s0, %s1220_s16  ;;  %s18_s13 = int_to_ptr.vmem [resolvable:$true] %s17_s13 }
   0x4   :  { %p1224_p1 = scmp.lt.u32.totalorder %s1220_s16, %s1818_s0 }
   0x6   :  { %p1226_p2 = pnand %p1224_p1, %p1221_p0 }
   0x8   :  { %1229 = shalt.err (!%p1226_p2)
}
   0x9   :  { %s1230_s21 = scalar_lea.vmem %s18_s13, 2048  ;;  %p1235_p4 = scmp.lt.s32.totalorder %s18_s13, %s18_s13 }
   0xa   :  { %p1231_p3 = scmp.ne.s32.totalorder %s18_s13, %s1230_s21  ;;  %p1236_p5 = scmp.lt.s32.totalorder %s1230_s21, %s1230_s21 }
   0xc   :  { %p1237_p6 = por %p1236_p5, %p1235_p4 }
   0xe   :  { %p1238_p7 = pnand %p1237_p6, %p1231_p3 }
  0x10   :  { %1241 = shalt.err (!%p1238_p7)
}
  0x11   :  { %s1293_s22 = smov 128   ;;  %s1294_s23 = smov 8  }
  0x12   :  { %23 = dma.hbm_to_vmem [thread:$0]  %s1818_s0, 2048, %s18_s13, [#allocation4], %s1293_s22, %s1293_s22, %s1294_s23  }
  0x13   :  { %s1295_s26 = smov [#allocation6]   ;;  %s1242_s30 = scalar_lea.hbm %s1819_s1, 128 }
  0x14   :  { %s30_s27 = sshll.u32 %s1295_s26, 4  ;;  %p1243_p8 = scmp.ne.s32.totalorder %s1819_s1, %s1242_s30  ;;  %s31_s27 = int_to_ptr.vmem [resolvable:$true] %s30_s27 }
  0x15   :  { %p1246_p9 = scmp.lt.u32.totalorder %s1242_s30, %s1819_s1 }
  0x17   :  { %p1248_p10 = pnand %p1246_p9, %p1243_p8 }
  0x19   :  { %1251 = shalt.err (!%p1248_p10)
}
  0x1a   :  { %s1252_s8 = scalar_lea.vmem %s31_s27, 128  ;;  %p1257_p12 = scmp.lt.s32.totalorder %s31_s27, %s31_s27 }
  0x1b   :  { %p1253_p11 = scmp.ne.s32.totalorder %s31_s27, %s1252_s8  ;;  %p1258_p13 = scmp.lt.s32.totalorder %s1252_s8, %s1252_s8 }
  0x1d   :  { %p1259_p0 = por %p1258_p13, %p1257_p12 }
  0x1f   :  { %p1260_p1 = pnand %p1259_p0, %p1253_p11 }
  0x21   :  { %1263 = shalt.err (!%p1260_p1)
}
  0x22   :  { %33 = dma.hbm_to_vmem [thread:$0]  %s1819_s1, 128, %s31_s27, [#allocation7]  }
  0x23   :  { %1286 = dma.done.wait [#allocation4], 2048  }
  0x24   :  { %1287 = vsyncadd [#allocation4], 4294965248 }
  0x25   :  { %1288 = dma.done.wait [#allocation7], 128  }
  0x26   :  { %1289 = vsyncadd [#allocation7], 4294967168  ;;  %v50_v0 = vld [vmem:[#allocation3 + $0x40] sm:$0xff]  ;;  %vm76_vm0 = vcmask 261120   ;;  %v51_v5 = vld [vmem:[#allocation3 + $0x48] sm:$0xff]  ;;  %v125_v51 = vlaneseq  ;;  %vm304_vm1 = vcmask 1041409  }
  0x27   :  { %v58_v1 = vld [vmem:[#allocation6] sm:$0xff]  ;;  %v43_v6 = vld [vmem:[#allocation3 + $0x8] sm:$0xff]  ;;  %v52_v9 = vld [vmem:[#allocation3 + $0x50] sm:$0xff]  ;;  %vm306_vm2 = vcmask 1042434   ;;  %vm308_vm3 = vcmask 1043459   ;;  %vm310_vm4 = vcmask 1044484  }
  0x28   :  { %v42_v2 = vld [vmem:[#allocation3] sm:$0xff]  ;;  %v68_v3 = vmul.f32 %v58_v1, %v50_v0  ;;  %v69_v7 = vmul.f32 %v58_v1, %v51_v5  ;;  %v61_v8 = vmul.f32 %v58_v1, %v43_v6  ;;  %v44_v10 = vld [vmem:[#allocation3 + $0x10] sm:$0xff]  ;;  %v70_v15 = vmul.f32 %v58_v1, %v52_v9  ;;  %v53_v17 = vld [vmem:[#allocation3 + $0x58] sm:$0xff] }
  0x29   :  { %v60_v4 = vmul.f32 %v58_v1, %v42_v2  ;;  %v62_v16 = vmul.f32 %v58_v1, %v44_v10  ;;  %v45_v18 = vld [vmem:[#allocation3 + $0x18] sm:$0xff]  ;;  %v71_v21 = vmul.f32 %v58_v1, %v53_v17  ;;  %v54_v23 = vld [vmem:[#allocation3 + $0x60] sm:$0xff]  ;;  %v55_v29 = vld [vmem:[#allocation3 + $0x68] sm:$0xff]  ;;  %v1361_v54 = vshrl.u32 %v125_v51, 7 }
  0x2a   :  { %v101_v11 = vsel %vm76_vm0, %v68_v3, 0.0  ;;  %v104_v13 = vsel %vm76_vm0, %v69_v7, 0.0  ;;  %v80_v14 = vsel %vm76_vm0, %v61_v8, 0.0  ;;  %v107_v19 = vsel %vm76_vm0, %v70_v15, 0.0  ;;  %v46_v24 = vld [vmem:[#allocation3 + $0x20] sm:$0xff]  ;;  %v47_v30 = vld [vmem:[#allocation3 + $0x28] sm:$0xff] }
  0x2b   :  { %v77_v12 = vsel %vm76_vm0, %v60_v4, 0.0  ;;  %102 = vadd.xlane.f32.xlu1 %v101_v11  ;;  %v83_v20 = vsel %vm76_vm0, %v62_v16, 0.0  ;;  %v63_v22 = vmul.f32 %v58_v1, %v45_v18  ;;  %v110_v25 = vsel %vm76_vm0, %v71_v21, 0.0  ;;  %v56_v35 = vld [vmem:[#allocation3 + $0x70] sm:$0xff]  ;;  %v57_v41 = vld [vmem:[#allocation3 + $0x78] sm:$0xff]  ;;  %1823 = vst [vmem:[#allocation12_spill] sm:$0xff] %v1361_v54 }
  0x2c   :  { %78 = vadd.xlane.f32.xlu0 %v77_v12  ;;  %v72_v27 = vmul.f32 %v58_v1, %v54_v23  ;;  %v64_v28 = vmul.f32 %v58_v1, %v46_v24  ;;  %v73_v33 = vmul.f32 %v58_v1, %v55_v29  ;;  %v65_v34 = vmul.f32 %v58_v1, %v47_v30  ;;  %v48_v36 = vld [vmem:[#allocation3 + $0x30] sm:$0xff]  ;;  %v49_v42 = vld [vmem:[#allocation3 + $0x38] sm:$0xff] }
  0x2d   :  { %v86_v26 = vsel %vm76_vm0, %v63_v22, 0.0  ;;  %v74_v39 = vmul.f32 %v58_v1, %v56_v35  ;;  %v66_v40 = vmul.f32 %v58_v1, %v48_v36  ;;  %v75_v45 = vmul.f32 %v58_v1, %v57_v41 }
  0x2e   :  { %v113_v31 = vsel %vm76_vm0, %v72_v27, 0.0  ;;  %v89_v32 = vsel %vm76_vm0, %v64_v28, 0.0  ;;  %v116_v37 = vsel %vm76_vm0, %v73_v33, 0.0  ;;  %v92_v38 = vsel %vm76_vm0, %v65_v34, 0.0 }
  0x2f   :  { %105 = vadd.xlane.f32.xlu1 %v104_v13  ;;  %v119_v43 = vsel %vm76_vm0, %v74_v39, 0.0  ;;  %v95_v44 = vsel %vm76_vm0, %v66_v40, 0.0  ;;  %v67_v46 = vmul.f32 %v58_v1, %v49_v42  ;;  %v122_v47 = vsel %vm76_vm0, %v75_v45, 0.0 }
  0x30   :  { %81 = vadd.xlane.f32.xlu0 %v80_v14  ;;  %v1364_v57 = vsub.s32 7, %v1361_v54  ;;  %v1370_v0 = vand.u32 127, %v125_v51  ;;  %v1379_v7 = vstv %s1820_s2  ;;  %vm312_vm5 = vcmask 1045509   ;;  %s1297_s2 = smov [#allocation8]  }
  0x31   :  { %v98_v48 = vsel %vm76_vm0, %v67_v46, 0.0  ;;  %vm314_vm6 = vcmask 1046534   ;;  %vm316_vm7 = vcmask 1047559   ;;  %vm327_vm8 = vcmask 56320   ;;  %s1131_s11 = sshll.u32 %s1297_s2, 4  ;;  %s1132_s11 = int_to_ptr.vmem [resolvable:$true] %s1131_s11 }
  0x32   :  { %v1385_v14 = vsub.s32 %v1370_v0, %v1361_v54  ;;  %vm1121_vm9 = vcmask 113664   ;;  %s1264_s12 = scalar_lea.vmem %s1132_s11, 256  ;;  %p1269_p3 = scmp.lt.s32.totalorder %s1132_s11, %s1132_s11 }
  0x33   :  { %108 = vadd.xlane.f32.xlu1 %v107_v19  ;;  %p1265_p2 = scmp.ne.s32.totalorder %s1132_s11, %s1264_s12  ;;  %p1270_p4 = scmp.lt.s32.totalorder %s1264_s12, %s1264_s12 }
  0x34   :  { %84 = vadd.xlane.f32.xlu0 %v83_v20 }
  0x35   :  { %p1271_p5 = por %p1270_p4, %p1269_p3 }
  0x37   :  { %111 = vadd.xlane.f32.xlu1 %v110_v25  ;;  %p1272_p6 = pnand %p1271_p5, %p1265_p2 }
  0x38   :  { %87 = vadd.xlane.f32.xlu0 %v86_v26 }
  0x3b   :  { %114 = vadd.xlane.f32.xlu1 %v113_v31 }
  0x3c   :  { %90 = vadd.xlane.f32.xlu0 %v89_v32 }
  0x3f   :  { %117 = vadd.xlane.f32.xlu1 %v116_v37 }
  0x40   :  { %93 = vadd.xlane.f32.xlu0 %v92_v38 }
  0x43   :  { %120 = vadd.xlane.f32.xlu1 %v119_v43 }
  0x44   :  { %96 = vadd.xlane.f32.xlu0 %v95_v44 }
  0x47   :  { %123 = vadd.xlane.f32.xlu1 %v122_v47 }
  0x48   :  { %99 = vadd.xlane.f32.xlu0 %v98_v48 }
  0xb8   :  { %v103_v49 = vpop.xlane.xlu1 %102 }
  0xb9   :  { %v79_v50 = vpop.xlane.xlu0 %78  ;;  %v160_v60 = vrot.slane %v103_v49, %v1364_v57 }
  0xba   :  { %v128_v61 = vrot.slane %v79_v50, %v1364_v57 }
  0xbb   :  { %v197_v8 = vadd.f32 %v160_v60, %v103_v49 }
  0xbc   :  { %v106_v52 = vpop.xlane.xlu1 %105  ;;  %v189_v9 = vadd.f32 %v128_v61, %v79_v50 }
  0xbd   :  { %v82_v53 = vpop.xlane.xlu0 %81  ;;  %v164_v62 = vrot.slane %v106_v52, %v1364_v57  ;;  %v1388_v21 = vadd.f32 %v1379_v7, %v197_v8 }
  0xbe   :  { %v132_v63 = vrot.slane %v82_v53, %v1364_v57  ;;  %v1391_v22 = vadd.f32 %v1379_v7, %v189_v9 }
  0xbf   :  { %v198_v10 = vadd.f32 %v164_v62, %v106_v52  ;;  %v275_v37 = vrot.slane %v1388_v21, %v1385_v14 }
  0xc0   :  { %v109_v55 = vpop.xlane.xlu1 %108  ;;  %v190_v11 = vadd.f32 %v132_v63, %v82_v53  ;;  %v243_v38 = vrot.slane %v1391_v22, %v1385_v14 }
  0xc1   :  { %v85_v56 = vpop.xlane.xlu0 %84  ;;  %v168_v1 = vrot.slane %v109_v55, %v1364_v57  ;;  %v1396_v25 = vadd.f32 %v1379_v7, %v198_v10 }
  0xc2   :  { %v136_v2 = vrot.slane %v85_v56, %v1364_v57  ;;  %v1399_v26 = vadd.f32 %v1379_v7, %v190_v11 }
  0xc3   :  { %v199_v15 = vadd.f32 %v168_v1, %v109_v55  ;;  %v279_v41 = vrot.slane %v1396_v25, %v1385_v14 }
  0xc4   :  { %v112_v58 = vpop.xlane.xlu1 %111  ;;  %v191_v16 = vadd.f32 %v136_v2, %v85_v56  ;;  %v247_v42 = vrot.slane %v1399_v26, %v1385_v14 }
  0xc5   :  { %v88_v59 = vpop.xlane.xlu0 %87  ;;  %v172_v3 = vrot.slane %v112_v58, %v1364_v57  ;;  %v1402_v31 = vadd.f32 %v1379_v7, %v199_v15  ;;  %v318_v61 = vsel %vm304_vm1, %v279_v41, %v275_v37  ;;  %v1490_v37 = vsub.s32 1, %v1361_v54 }
  0xc6   :  { %v140_v4 = vrot.slane %v88_v59, %v1364_v57  ;;  %v1405_v32 = vadd.f32 %v1379_v7, %v191_v16  ;;  %v305_v62 = vsel %vm304_vm1, %v247_v42, %v243_v38  ;;  %v1493_v38 = vsub.s32 4, %v1361_v54 }
  0xc7   :  { %v200_v17 = vadd.f32 %v172_v3, %v112_v58  ;;  %v283_v49 = vrot.slane %v1402_v31, %v1385_v14 }
  0xc8   :  { %v115_v5 = vpop.xlane.xlu1 %114  ;;  %v192_v18 = vadd.f32 %v140_v4, %v88_v59  ;;  %v251_v50 = vrot.slane %v1405_v32, %v1385_v14 }
  0xc9   :  { %v91_v6 = vpop.xlane.xlu0 %90  ;;  %v176_v12 = vrot.slane %v115_v5, %v1364_v57  ;;  %v1408_v33 = vadd.f32 %v1379_v7, %v200_v17 }
  0xca   :  { %v144_v13 = vrot.slane %v91_v6, %v1364_v57  ;;  %v1411_v34 = vadd.f32 %v1379_v7, %v192_v18  ;;  %v307_v8 = vsel %vm306_vm2, %v251_v50, %v305_v62  ;;  %v1507_v50 = vsub.s32 2, %v1361_v54 }
  0xcb   :  { %v201_v27 = vadd.f32 %v176_v12, %v115_v5  ;;  %v287_v51 = vrot.slane %v1408_v33, %v1385_v14 }
  0xcc   :  { %v118_v19 = vpop.xlane.xlu1 %117  ;;  %v193_v28 = vadd.f32 %v144_v13, %v91_v6  ;;  %v255_v52 = vrot.slane %v1411_v34, %v1385_v14  ;;  %v319_v6 = vsel %vm306_vm2, %v283_v49, %v318_v61 }
  0xcd   :  { %v94_v20 = vpop.xlane.xlu0 %93  ;;  %v180_v23 = vrot.slane %v118_v19, %v1364_v57  ;;  %v1424_v43 = vadd.f32 %v1379_v7, %v201_v27  ;;  %v320_v11 = vsel %vm308_vm3, %v287_v51, %v319_v6 }
  0xce   :  { %v148_v24 = vrot.slane %v94_v20, %v1364_v57  ;;  %v1427_v44 = vadd.f32 %v1379_v7, %v193_v28  ;;  %v309_v12 = vsel %vm308_vm3, %v255_v52, %v307_v8 }
  0xcf   :  { %v202_v29 = vadd.f32 %v180_v23, %v118_v19  ;;  %v291_v63 = vrot.slane %v1424_v43, %v1385_v14 }
  0xd0   :  { %v194_v30 = vadd.f32 %v148_v24, %v94_v20  ;;  %v121_v35 = vpop.xlane.xlu1 %120  ;;  %v259_v1 = vrot.slane %v1427_v44, %v1385_v14 }
  0xd1   :  { %v97_v36 = vpop.xlane.xlu0 %96  ;;  %v184_v39 = vrot.slane %v121_v35, %v1364_v57  ;;  %v1430_v45 = vadd.f32 %v1379_v7, %v202_v29  ;;  %v321_v16 = vsel %vm310_vm4, %v291_v63, %v320_v11 }
  0xd2   :  { %v152_v40 = vrot.slane %v97_v36, %v1364_v57  ;;  %v1433_v46 = vadd.f32 %v1379_v7, %v194_v30  ;;  %v311_v17 = vsel %vm310_vm4, %v259_v1, %v309_v12 }
  0xd3   :  { %v203_v47 = vadd.f32 %v184_v39, %v121_v35  ;;  %v295_v2 = vrot.slane %v1430_v45, %v1385_v14  ;;  %v1296_v35 = vmov 0  }
  0xd4   :  { %v195_v48 = vadd.f32 %v152_v40, %v97_v36  ;;  %v124_v53 = vpop.xlane.xlu1 %123  ;;  %v263_v3 = vrot.slane %v1433_v46, %v1385_v14  ;;  %1151 = vset.pattern.permute.xlu1 %v1296_v35  ;;  %1150 = vset.pattern.permute.xlu0 %v1296_v35  ;;  %v1487_v36 = vsub.s32 0, %v1361_v54 }
  0xd5   :  { %v100_v55 = vpop.xlane.xlu0 %99  ;;  %v1444_v56 = vadd.f32 %v1379_v7, %v203_v47  ;;  %v188_v59 = vrot.slane %v124_v53, %v1364_v57  ;;  %v322_v20 = vsel %vm312_vm5, %v295_v2, %v321_v16  ;;  %v1501_v47 = vsub.s32 5, %v1361_v54 }
  0xd6   :  { %v1447_v58 = vadd.f32 %v1379_v7, %v195_v48  ;;  %v156_v60 = vrot.slane %v100_v55, %v1364_v57  ;;  %v313_v23 = vsel %vm312_vm5, %v263_v3, %v311_v17  ;;  %v1540_v3 = vsub.s32 3, %v1361_v54 }
  0xd7   :  { %v204_v4 = vadd.f32 %v188_v59, %v124_v53  ;;  %v299_v9 = vrot.slane %v1444_v56, %v1385_v14  ;;  %v1520_v59 = vsub.s32 6, %v1361_v54 }
  0xd8   :  { %v196_v5 = vadd.f32 %v156_v60, %v100_v55  ;;  %v267_v10 = vrot.slane %v1447_v58, %v1385_v14 }
  0xd9   :  { %v221_v13 = vadd.f32 %v1379_v7, %v204_v4  ;;  %v323_v24 = vsel %vm314_vm6, %v299_v9, %v322_v20 }
  0xda   :  { %v1471_v15 = vadd.f32 %v1379_v7, %v196_v5  ;;  %v315_v7 = vsel %vm314_vm6, %v267_v10, %v313_v23 }
  0xdb   :  { %v303_v18 = vrot.slane %v221_v13, %v1385_v14 }
  0xdc   :  { %v271_v19 = vrot.slane %v1471_v15, %v1385_v14 }
  0xdd   :  { %v324_v27 = vsel %vm316_vm7, %v303_v18, %v323_v24 }
  0xde   :  { %v317_v28 = vsel %vm316_vm7, %v271_v19, %v315_v7  ;;  %v331_v29 = vsel %vm327_vm8, %v324_v27, -inf }
  0xdf   :  { %v328_v30 = vsel %vm327_vm8, %v317_v28, -inf  ;;  %332 = vmax.xlane.f32.xlu1 %v331_v29 }
  0xe0   :  { %329 = vmax.xlane.f32.xlu0 %v328_v30 }
 0x16c   :  { %v333_v39 = vpop.xlane.xlu1 %332 }
 0x16d   :  { %v1495_v40 = vpop.xlane.xlu0 %329  ;;  %v371_v41 = vrot.slane %v333_v39, %v1487_v36  ;;  %v387_v48 = vrot.slane %v333_v39, %v1493_v38  ;;  %v375_v51 = vrot.slane %v333_v39, %v1490_v37  ;;  %v391_v60 = vrot.slane %v333_v39, %v1501_v47 }
 0x16e   :  { %v339_v42 = vrot.slane %v1495_v40, %v1487_v36  ;;  %v343_v49 = vrot.slane %v1495_v40, %v1490_v37  ;;  %v395_v1 = vrot.slane %v333_v39, %v1520_v59  ;;  %v399_v6 = vrot.slane %v333_v39, %v1364_v57 }
 0x16f   :  { %v1511_v52 = vsub.f32 %v1388_v21, %v371_v41  ;;  %v1524_v61 = vsub.f32 %v1424_v43, %v387_v48  ;;  %v1529_v21 = vsub.f32 %v1396_v25, %v375_v51  ;;  %v1536_v2 = vsub.f32 %v1430_v45, %v391_v60 }
 0x170   :  { %v1514_v53 = vsub.f32 %v1391_v22, %v339_v42  ;;  %v1517_v55 = vsub.f32 %v1399_v26, %v343_v49  ;;  %v347_v26 = vrot.slane %v1495_v40, %v1507_v50  ;;  %v379_v25 = vrot.slane %v333_v39, %v1507_v50 }
 0x171   :  { %v448_v22 = vmul.f32 1.442695, %v1511_v52  ;;  %v456_v43 = vmul.f32 1.442695, %v1524_v61  ;;  %v450_v4 = vmul.f32 1.442695, %v1529_v21  ;;  %v1549_v8 = vsub.f32 %v1444_v56, %v395_v1 }
 0x172   :  { %v432_v62 = vmul.f32 1.442695, %v1514_v53  ;;  %v434_v63 = vmul.f32 1.442695, %v1517_v55  ;;  %v1545_v5 = vsub.f32 %v1405_v32, %v347_v26  ;;  %v458_v45 = vmul.f32 1.442695, %v1536_v2 }
 0x173   :  { %v1553_v9 = vsub.f32 %v1402_v31, %v379_v25  ;;  %v351_v10 = vrot.slane %v1495_v40, %v1540_v3  ;;  %v1558_v32 = vsub.f32 %v221_v13, %v399_v6  ;;  %v460_v12 = vmul.f32 1.442695, %v1549_v8 }
 0x174   :  { %1152 = vpow2.f32 %v434_v63  ;;  %v436_v11 = vmul.f32 1.442695, %v1545_v5  ;;  %v383_v31 = vrot.slane %v333_v39, %v1540_v3  ;;  %v355_v24 = vrot.slane %v1495_v40, %v1493_v38 }
 0x175   :  { %1154 = vpow2.f32 %v432_v62  ;;  %v452_v17 = vmul.f32 1.442695, %v1553_v9  ;;  %v1569_v18 = vsub.f32 %v1411_v34, %v351_v10  ;;  %v462_v13 = vmul.f32 1.442695, %v1558_v32 }
 0x176   :  { %1156 = vpow2.f32 %v448_v22  ;;  %v1579_v23 = vsub.f32 %v1408_v33, %v383_v31  ;;  %v359_v33 = vrot.slane %v1495_v40, %v1501_v47  ;;  %v1594_v29 = vsub.f32 %v1427_v44, %v355_v24 }
 0x177   :  { %1158 = vpow2.f32 %v456_v43  ;;  %v438_v34 = vmul.f32 1.442695, %v1569_v18  ;;  %v363_v39 = vrot.slane %v1495_v40, %v1520_v59  ;;  %v367_v49 = vrot.slane %v1495_v40, %v1364_v57 }
 0x178   :  { %1160 = vpow2.f32 %v450_v4  ;;  %v454_v28 = vmul.f32 1.442695, %v1579_v23  ;;  %v1605_v41 = vsub.f32 %v1433_v46, %v359_v33  ;;  %v440_v42 = vmul.f32 1.442695, %v1594_v29 }
 0x179   :  { %1162 = vpow2.f32 %v458_v45  ;;  %v1617_v51 = vsub.f32 %v1447_v58, %v363_v39  ;;  %v1625_v62 = vsub.f32 %v1471_v15, %v367_v49 }
 0x17a   :  { %1164 = vpow2.f32 %v436_v11  ;;  %v442_v46 = vmul.f32 1.442695, %v1605_v41 }
 0x17b   :  { %1166 = vpow2.f32 %v460_v12  ;;  %v444_v63 = vmul.f32 1.442695, %v1617_v51  ;;  %v446_v58 = vmul.f32 1.442695, %v1625_v62 }
 0x17c   :  { %1168 = vpow2.f32 %v452_v17 }
 0x17d   :  { %1170 = vpow2.f32 %v462_v13 }
 0x17e   :  { %v1561_v16 = vpop.eup %1152  ;;  %1172 = vpow2.f32 %v438_v34 }
 0x17f   :  { %v1563_v56 = vpop.eup %1154  ;;  %484 = vperm.xlu1 %1151, %v1561_v16   ;;  %1174 = vpow2.f32 %v454_v28 }
 0x180   :  { %481 = vperm.xlu0 %1150, %v1563_v56   ;;  %v1573_v19 = vpop.eup %1156  ;;  %1176 = vpow2.f32 %v440_v42 }
 0x181   :  { %v1575_v20 = vpop.eup %1158  ;;  %1178 = vpow2.f32 %v442_v46 }
 0x182   :  { %v1585_v7 = vpop.eup %1160  ;;  %1180 = vpow2.f32 %v444_v63 }
 0x183   :  { %505 = vperm.xlu1 %1151, %v1573_v19   ;;  %v1587_v27 = vpop.eup %1162  ;;  %1182 = vpow2.f32 %v446_v58 }
 0x184   :  { %517 = vperm.xlu0 %1150, %v1575_v20   ;;  %v1597_v30 = vpop.eup %1164 }
 0x185   :  { %v1599_v35 = vpop.eup %1166 }
 0x186   :  { %v1609_v44 = vpop.eup %1168 }
 0x187   :  { %508 = vperm.xlu1 %1151, %v1585_v7   ;;  %v1611_v48 = vpop.eup %1170 }
 0x188   :  { %520 = vperm.xlu0 %1150, %v1587_v27   ;;  %v1621_v60 = vpop.eup %1172 }
 0x189   :  { %v1628_v22 = vpop.eup %1174 }
 0x18a   :  { %v1632_v40 = vpop.eup %1176 }
 0x18b   :  { %487 = vperm.xlu1 %1151, %v1597_v30   ;;  %v1635_v26 = vpop.eup %1178 }
 0x18c   :  { %523 = vperm.xlu0 %1150, %v1599_v35   ;;  %v1638_v15 = vpop.eup %1180 }
 0x18d   :  { %v1641_v1 = vpop.eup %1182 }
 0x18f   :  { %511 = vperm.xlu1 %1151, %v1609_v44  }
 0x190   :  { %526 = vperm.xlu0 %1150, %v1611_v48  }
 0x193   :  { %490 = vperm.xlu1 %1151, %v1621_v60  }
 0x197   :  { %514 = vperm.xlu1 %1151, %v1628_v22  }
 0x19b   :  { %493 = vperm.xlu1 %1151, %v1632_v40  }
 0x19f   :  { %496 = vperm.xlu1 %1151, %v1635_v26  }
 0x1a3   :  { %499 = vperm.xlu1 %1151, %v1638_v15  }
 0x1a7   :  { %502 = vperm.xlu1 %1151, %v1641_v1  }
 0x1fe   :  { %v485_v43 = vpop.permute.xlu1 %484 }
 0x1ff   :  { %v482_v25 = vpop.permute.xlu0 %481 }
 0x202   :  { %v506_v4 = vpop.permute.xlu1 %505 }
 0x203   :  { %v518_v6 = vpop.permute.xlu0 %517  ;;  %v563_v34 = vrot.slane %v506_v4, %v1385_v14 }
 0x204   :  { %v579_v42 = vrot.slane %v518_v6, %v1385_v14 }
 0x206   :  { %v509_v45 = vpop.permute.xlu1 %508 }
 0x207   :  { %v521_v11 = vpop.permute.xlu0 %520  ;;  %v567_v13 = vrot.slane %v509_v45, %v1385_v14 }
 0x208   :  { %v583_v63 = vrot.slane %v521_v11, %v1385_v14  ;;  %v535_v11 = vrot.slane %v485_v43, %v1385_v14 }
 0x209   :  { %v599_v33 = vsel %vm304_vm1, %v567_v13, %v563_v34 }
 0x20a   :  { %v488_v10 = vpop.permute.xlu1 %487 }
 0x20b   :  { %v524_v31 = vpop.permute.xlu0 %523 }
 0x20c   :  { %v587_v45 = vrot.slane %v524_v31, %v1385_v14  ;;  %v539_v31 = vrot.slane %v488_v10, %v1385_v14 }
 0x20e   :  { %v512_v12 = vpop.permute.xlu1 %511 }
 0x20f   :  { %v571_v24 = vrot.slane %v512_v12, %v1385_v14  ;;  %v527_v46 = vpop.permute.xlu0 %526 }
 0x210   :  { %v591_v4 = vrot.slane %v527_v46, %v1385_v14 }
 0x211   :  { %v600_v49 = vsel %vm306_vm2, %v571_v24, %v599_v33  ;;  %v531_v33 = vrot.slane %v482_v25, %v1385_v14 }
 0x212   :  { %v491_v17 = vpop.permute.xlu1 %490 }
 0x213   :  { %v592_v46 = vsel %vm304_vm1, %v535_v11, %v531_v33 }
 0x216   :  { %v515_v28 = vpop.permute.xlu1 %514 }
 0x217   :  { %v575_v39 = vrot.slane %v515_v28, %v1385_v14 }
 0x219   :  { %v601_v58 = vsel %vm308_vm3, %v575_v39, %v600_v49  ;;  %v543_v39 = vrot.slane %v491_v17, %v1385_v14 }
 0x21a   :  { %v602_v12 = vsel %vm310_vm4, %v579_v42, %v601_v58  ;;  %v494_v54 = vpop.permute.xlu1 %493  ;;  %v593_v58 = vsel %vm306_vm2, %v539_v31, %v592_v46 }
 0x21b   :  { %v603_v13 = vsel %vm312_vm5, %v583_v63, %v602_v12  ;;  %v547_v42 = vrot.slane %v494_v54, %v1385_v14  ;;  %v594_v43 = vsel %vm308_vm3, %v543_v39, %v593_v58 }
 0x21c   :  { %v604_v34 = vsel %vm314_vm6, %v587_v45, %v603_v13 }
 0x21d   :  { %v605_v6 = vsel %vm316_vm7, %v591_v4, %v604_v34  ;;  %v595_v25 = vsel %vm310_vm4, %v547_v42, %v594_v43 }
 0x21e   :  { %v497_v28 = vpop.permute.xlu1 %496  ;;  %v611_v24 = vsel %vm327_vm8, %v605_v6, 0.0 }
 0x21f   :  { %612 = vadd.xlane.f32.xlu0 %v611_v24  ;;  %v551_v63 = vrot.slane %v497_v28, %v1385_v14 }
 0x221   :  { %v596_v10 = vsel %vm312_vm5, %v551_v63, %v595_v25 }
 0x222   :  { %v500_v49 = vpop.permute.xlu1 %499 }
 0x223   :  { %v555_v45 = vrot.slane %v500_v49, %v1385_v14 }
 0x225   :  { %v597_v54 = vsel %vm314_vm6, %v555_v45, %v596_v10 }
 0x226   :  { %v503_v12 = vpop.permute.xlu1 %502 }
 0x227   :  { %v559_v17 = vrot.slane %v503_v12, %v1385_v14 }
 0x229   :  { %v598_v4 = vsel %vm316_vm7, %v559_v17, %v597_v54 }
 0x22a   :  { %v608_v13 = vsel %vm327_vm8, %v598_v4, 0.0 }
 0x22b   :  { %609 = vadd.xlane.f32.xlu1 %v608_v13 }
 0x2ac   :  { %v613_v42 = vpop.xlane.xlu0 %612 }
 0x2ad   :  { %v651_v63 = vrot.slane %v613_v42, %v1487_v36  ;;  %v655_v43 = vrot.slane %v613_v42, %v1490_v37  ;;  %v659_v17 = vrot.slane %v613_v42, %v1507_v50  ;;  %v663_v4 = vrot.slane %v613_v42, %v1540_v3 }
 0x2b8   :  { %v610_v34 = vpop.xlane.xlu1 %609 }
 0x2b9   :  { %v623_v6 = vrot.slane %v610_v34, %v1490_v37  ;;  %v619_v28 = vrot.slane %v610_v34, %v1487_v36  ;;  %v627_v24 = vrot.slane %v610_v34, %v1507_v50  ;;  %v631_v11 = vrot.slane %v610_v34, %v1540_v3 }
 0x2ba   :  { %v635_v33 = vrot.slane %v610_v34, %v1493_v38  ;;  %v639_v31 = vrot.slane %v610_v34, %v1501_v47  ;;  %v643_v39 = vrot.slane %v610_v34, %v1520_v59  ;;  %v647_v49 = vrot.slane %v610_v34, %v1364_v57 }
 0x2bb   :  { %1184 = vrcp.f32 %v623_v6 }
 0x2bc   :  { %1186 = vrcp.f32 %v619_v28  ;;  %v667_v28 = vrot.slane %v613_v42, %v1493_v38 }
 0x2bd   :  { %1188 = vrcp.f32 %v627_v24  ;;  %v671_v24 = vrot.slane %v613_v42, %v1501_v47 }
 0x2be   :  { %1190 = vrcp.f32 %v631_v11 }
 0x2bf   :  { %1192 = vrcp.f32 %v635_v33 }
 0x2c0   :  { %1194 = vrcp.f32 %v639_v31 }
 0x2c1   :  { %1196 = vrcp.f32 %v643_v39  ;;  %v679_v39 = vrot.slane %v613_v42, %v1364_v57 }
 0x2c2   :  { %1198 = vrcp.f32 %v647_v49 }
 0x2c3   :  { %1200 = vrcp.f32 %v651_v63 }
 0x2c4   :  { %1202 = vrcp.f32 %v655_v43 }
 0x2c5   :  { %v1185_v46 = vpop.eup %1184  ;;  %1204 = vrcp.f32 %v659_v17 }
 0x2c6   :  { %v1187_v58 = vpop.eup %1186  ;;  %v699_v45 = vmul.f32 %v1185_v46, %v1561_v16  ;;  %1206 = vrcp.f32 %v663_v4 }
 0x2c7   :  { %v1189_v25 = vpop.eup %1188  ;;  %v697_v12 = vmul.f32 %v1187_v58, %v1563_v56  ;;  %1208 = vrcp.f32 %v667_v28 }
 0x2c8   :  { %v1191_v10 = vpop.eup %1190  ;;  %850 = vperm.xlu1 %1151, %v699_v45   ;;  %v701_v54 = vmul.f32 %v1189_v25, %v1597_v30  ;;  %1210 = vlog2.f32 %v610_v34 }
 0x2c9   :  { %847 = vperm.xlu0 %1150, %v697_v12   ;;  %v1193_v13 = vpop.eup %1192  ;;  %v703_v16 = vmul.f32 %v1191_v10, %v1621_v60  ;;  %v675_v60 = vrot.slane %v613_v42, %v1520_v59  ;;  %1212 = vrcp.f32 %v671_v24 }
 0x2ca   :  { %v1195_v6 = vpop.eup %1194  ;;  %v705_v56 = vmul.f32 %v1193_v13, %v1632_v40  ;;  %1214 = vlog2.f32 %v613_v42 }
 0x2cb   :  { %v1197_v11 = vpop.eup %1196  ;;  %v707_v30 = vmul.f32 %v1195_v6, %v1635_v26  ;;  %1216 = vrcp.f32 %v675_v60 }
 0x2cc   :  { %853 = vperm.xlu1 %1151, %v701_v54   ;;  %v1199_v33 = vpop.eup %1198  ;;  %v709_v31 = vmul.f32 %v1197_v11, %v1638_v15  ;;  %1218 = vrcp.f32 %v679_v39 }
 0x2cd   :  { %856 = vperm.xlu0 %1150, %v703_v16   ;;  %v1201_v49 = vpop.eup %1200  ;;  %v711_v40 = vmul.f32 %v1199_v33, %v1641_v1 }
 0x2ce   :  { %v1203_v46 = vpop.eup %1202  ;;  %v713_v26 = vmul.f32 %v1201_v49, %v1573_v19 }
 0x2cf   :  { %v1205_v34 = vpop.eup %1204  ;;  %v715_v63 = vmul.f32 %v1203_v46, %v1585_v7 }
 0x2d0   :  { %859 = vperm.xlu1 %1151, %v705_v56   ;;  %v1207_v58 = vpop.eup %1206  ;;  %v717_v45 = vmul.f32 %v1205_v34, %v1609_v44 }
 0x2d1   :  { %862 = vperm.xlu0 %1150, %v707_v30   ;;  %v1209_v15 = vpop.eup %1208  ;;  %v719_v1 = vmul.f32 %v1207_v58, %v1628_v22 }
 0x2d2   :  { %v1211_v43 = vpop.eup %1210  ;;  %v721_v19 = vmul.f32 %v1209_v15, %v1575_v20 }
 0x2d3   :  { %v1213_v25 = vpop.eup %1212  ;;  %v729_v12 = vmul.f32 0.6931472, %v1211_v43 }
 0x2d4   :  { %865 = vperm.xlu1 %1151, %v709_v31   ;;  %v1215_v42 = vpop.eup %1214  ;;  %v723_v17 = vmul.f32 %v1213_v25, %v1587_v27 }
 0x2d5   :  { %868 = vperm.xlu0 %1150, %v711_v40   ;;  %v1217_v10 = vpop.eup %1216  ;;  %v731_v54 = vmul.f32 0.6931472, %v1215_v42  ;;  %v741_v44 = vrot.slane %v729_v12, %v1490_v37  ;;  %v737_v13 = vrot.slane %v729_v12, %v1487_v36  ;;  %v745_v56 = vrot.slane %v729_v12, %v1507_v50 }
 0x2d6   :  { %v1219_v7 = vpop.eup %1218  ;;  %v725_v4 = vmul.f32 %v1217_v10, %v1599_v35  ;;  %v757_v11 = vrot.slane %v729_v12, %v1501_v47  ;;  %v765_v33 = vrot.slane %v729_v12, %v1364_v57 }
 0x2d7   :  { %v727_v22 = vmul.f32 %v1219_v7, %v1611_v48  ;;  %v815_v16 = vsub.f32 %v1517_v55, %v741_v44  ;;  %v773_v20 = vrot.slane %v731_v54, %v1490_v37  ;;  %v814_v27 = vsub.f32 %v1514_v53, %v737_v13 }
 0x2d8   :  { %871 = vperm.xlu1 %1151, %v713_v26   ;;  %v769_v6 = vrot.slane %v731_v54, %v1487_v36  ;;  %v777_v28 = vrot.slane %v731_v54, %v1507_v50  ;;  %v781_v37 = vrot.slane %v731_v54, %v1540_v3  ;;  %v816_v53 = vsub.f32 %v1545_v5, %v745_v56 }
 0x2d9   :  { %874 = vperm.xlu0 %1150, %v715_v63   ;;  %v823_v35 = vsub.f32 %v1529_v21, %v773_v20  ;;  %v749_v36 = vrot.slane %v729_v12, %v1540_v3  ;;  %v785_v24 = vrot.slane %v731_v54, %v1493_v38  ;;  %v753_v50 = vrot.slane %v729_v12, %v1493_v38 }
 0x2da   :  { %v822_v48 = vsub.f32 %v1511_v52, %v769_v6  ;;  %v824_v55 = vsub.f32 %v1553_v9, %v777_v28  ;;  %v825_v21 = vsub.f32 %v1579_v23, %v781_v37  ;;  %v789_v3 = vrot.slane %v731_v54, %v1501_v47 }
 0x2db   :  { %v817_v52 = vsub.f32 %v1569_v18, %v749_v36  ;;  %v826_v9 = vsub.f32 %v1524_v61, %v785_v24  ;;  %v818_v5 = vsub.f32 %v1594_v29, %v753_v50  ;;  %v819_v23 = vsub.f32 %v1605_v41, %v757_v11 }
 0x2dc   :  { %877 = vperm.xlu1 %1151, %v717_v45   ;;  %v793_v30 = vrot.slane %v731_v54, %v1520_v59  ;;  %v827_v18 = vsub.f32 %v1536_v2, %v789_v3  ;;  %v761_v38 = vrot.slane %v729_v12, %v1520_v59  ;;  %v797_v47 = vrot.slane %v731_v54, %v1364_v57 }
 0x2dd   :  { %880 = vperm.xlu0 %1150, %v719_v1   ;;  %v821_v41 = vsub.f32 %v1625_v62, %v765_v33 }
 0x2de   :  { %v828_v61 = vsub.f32 %v1549_v8, %v793_v30  ;;  %v820_v29 = vsub.f32 %v1617_v51, %v761_v38  ;;  %v829_v60 = vsub.f32 %v1558_v32, %v797_v47 }
 0x2e0   :  { %883 = vperm.xlu1 %1151, %v721_v19  }
 0x2e1   :  { %886 = vperm.xlu0 %1150, %v723_v17  }
 0x2e4   :  { %889 = vperm.xlu1 %1151, %v725_v4   ;;  %v1038_v4 = vadd.s32 4294967289, %v1370_v0 }
 0x2e5   :  { %892 = vperm.xlu0 %1150, %v727_v22  }
 0x2e8   :  { %994 = vperm.xlu1 %1151, %v815_v16  }
 0x2e9   :  { %991 = vperm.xlu0 %1150, %v814_v27  }
 0x2ec   :  { %1018 = vperm.xlu1 %1151, %v823_v35  }
 0x2ed   :  { %1015 = vperm.xlu0 %1150, %v822_v48   ;;  %v1824_v48 = vld [vmem:[#allocation12_spill] sm:$0xff] }
 0x2ee   :  { %v1041_v56 = vsub.s32 %v1038_v4, %v1824_v48 }
 0x2f0   :  { %1021 = vperm.xlu1 %1151, %v824_v55  }
 0x2f1   :  { %997 = vperm.xlu0 %1150, %v816_v53  }
 0x2f4   :  { %1024 = vperm.xlu1 %1151, %v825_v21  }
 0x2f5   :  { %1000 = vperm.xlu0 %1150, %v817_v52  }
 0x2f8   :  { %1027 = vperm.xlu1 %1151, %v826_v9  }
 0x2f9   :  { %1003 = vperm.xlu0 %1150, %v818_v5  }
 0x2fc   :  { %1006 = vperm.xlu1 %1151, %v819_v23  }
 0x2fd   :  { %1030 = vperm.xlu0 %1150, %v827_v18  }
 0x300   :  { %1033 = vperm.xlu1 %1151, %v828_v61  }
 0x301   :  { %1009 = vperm.xlu0 %1150, %v820_v29  }
 0x304   :  { %1012 = vperm.xlu1 %1151, %v821_v41  }
 0x305   :  { %1036 = vperm.xlu0 %1150, %v829_v60  }
 0x347   :  { %v851_v2 = vpop.permute.xlu1 %850 }
 0x348   :  { %v848_v59 = vpop.permute.xlu0 %847  ;;  %v901_v42 = vrot.slane %v851_v2, %v1385_v14 }
 0x349   :  { %v897_v12 = vrot.slane %v848_v59, %v1385_v14 }
 0x34b   :  { %v854_v31 = vpop.permute.xlu1 %853  ;;  %v958_v7 = vsel %vm304_vm1, %v901_v42, %v897_v12 }
 0x34c   :  { %v857_v39 = vpop.permute.xlu0 %856  ;;  %v905_v10 = vrot.slane %v854_v31, %v1385_v14 }
 0x34d   :  { %v909_v54 = vrot.slane %v857_v39, %v1385_v14 }
 0x34e   :  { %v959_v22 = vsel %vm306_vm2, %v905_v10, %v958_v7 }
 0x34f   :  { %v860_v49 = vpop.permute.xlu1 %859  ;;  %v960_v35 = vsel %vm308_vm3, %v909_v54, %v959_v22 }
 0x350   :  { %v863_v8 = vpop.permute.xlu0 %862  ;;  %v913_v13 = vrot.slane %v860_v49, %v1385_v14 }
 0x351   :  { %v917_v28 = vrot.slane %v863_v8, %v1385_v14 }
 0x352   :  { %v961_v0 = vsel %vm310_vm4, %v913_v13, %v960_v35 }
 0x353   :  { %v1740_v40 = vpop.permute.xlu1 %865  ;;  %v962_v52 = vsel %vm312_vm5, %v917_v28, %v961_v0 }
 0x354   :  { %v1742_v46 = vpop.permute.xlu0 %868  ;;  %v921_v5 = vrot.slane %v1740_v40, %v1385_v14 }
 0x355   :  { %v925_v18 = vrot.slane %v1742_v46, %v1385_v14 }
 0x357   :  { %v872_v51 = vpop.permute.xlu1 %871 }
 0x358   :  { %v875_v57 = vpop.permute.xlu0 %874  ;;  %v929_v16 = vrot.slane %v872_v51, %v1385_v14 }
 0x359   :  { %v933_v20 = vrot.slane %v875_v57, %v1385_v14 }
 0x35b   :  { %v878_v26 = vpop.permute.xlu1 %877  ;;  %v965_v37 = vsel %vm304_vm1, %v933_v20, %v929_v16 }
 0x35c   :  { %v881_v34 = vpop.permute.xlu0 %880  ;;  %v937_v27 = vrot.slane %v878_v26, %v1385_v14  ;;  %v963_v26 = vsel %vm314_vm6, %v921_v5, %v962_v52 }
 0x35d   :  { %v941_v53 = vrot.slane %v881_v34, %v1385_v14 }
 0x35e   :  { %v966_v36 = vsel %vm306_vm2, %v937_v27, %v965_v37 }
 0x35f   :  { %v884_v63 = vpop.permute.xlu1 %883  ;;  %v967_v38 = vsel %vm308_vm3, %v941_v53, %v966_v36 }
 0x360   :  { %v1744_v62 = vpop.permute.xlu0 %886  ;;  %v945_v21 = vrot.slane %v884_v63, %v1385_v14 }
 0x361   :  { %v949_v47 = vrot.slane %v1744_v62, %v1385_v14 }
 0x362   :  { %v968_v29 = vsel %vm310_vm4, %v945_v21, %v967_v38 }
 0x363   :  { %v1746_v32 = vpop.permute.xlu1 %889 }
 0x364   :  { %v1748_v58 = vpop.permute.xlu0 %892  ;;  %v953_v59 = vrot.slane %v1746_v32, %v1385_v14  ;;  %v969_v32 = vsel %vm312_vm5, %v949_v47, %v968_v29 }
 0x367   :  { %v995_v15 = vpop.permute.xlu1 %994 }
 0x368   :  { %v992_v45 = vpop.permute.xlu0 %991  ;;  %v1046_v50 = vrot.slane %v995_v15, %v1041_v56  ;;  %v957_v15 = vrot.slane %v1748_v58, %v1385_v14  ;;  %v964_v14 = vsel %vm316_vm7, %v925_v18, %v963_v26 }
 0x369   :  { %v1042_v9 = vrot.slane %v992_v45, %v1041_v56 }
 0x36b   :  { %v1019_v43 = vpop.permute.xlu1 %1018  ;;  %v1103_v31 = vsel %vm304_vm1, %v1046_v50, %v1042_v9 }
 0x36c   :  { %v1016_v1 = vpop.permute.xlu0 %1015  ;;  %v1078_v3 = vrot.slane %v1019_v43, %v1041_v56 }
 0x36d   :  { %v1074_v23 = vrot.slane %v1016_v1, %v1041_v56 }
 0x36f   :  { %v1022_v25 = vpop.permute.xlu1 %1021  ;;  %v1110_v40 = vsel %vm304_vm1, %v1078_v3, %v1074_v23 }
 0x370   :  { %v998_v19 = vpop.permute.xlu0 %997  ;;  %v1082_v61 = vrot.slane %v1022_v25, %v1041_v56  ;;  %v970_v25 = vsel %vm314_vm6, %v953_v59, %v969_v32 }
 0x371   :  { %v1050_v30 = vrot.slane %v998_v19, %v1041_v56 }
 0x372   :  { %v1111_v34 = vsel %vm306_vm2, %v1082_v61, %v1110_v40 }
 0x373   :  { %v1025_v17 = vpop.permute.xlu1 %1024  ;;  %v1104_v46 = vsel %vm306_vm2, %v1050_v30, %v1103_v31 }
 0x374   :  { %v1001_v44 = vpop.permute.xlu0 %1000  ;;  %v1086_v41 = vrot.slane %v1025_v17, %v1041_v56 }
 0x375   :  { %v1054_v33 = vrot.slane %v1001_v44, %v1041_v56  ;;  %v971_v44 = vsel %vm316_vm7, %v957_v15, %v970_v25 }
 0x376   :  { %v1112_v45 = vsel %vm308_vm3, %v1086_v41, %v1111_v34 }
 0x377   :  { %v1028_v6 = vpop.permute.xlu1 %1027  ;;  %v1105_v63 = vsel %vm308_vm3, %v1054_v33, %v1104_v46 }
 0x378   :  { %v1004_v55 = vpop.permute.xlu0 %1003  ;;  %v1090_v39 = vrot.slane %v1028_v6, %v1041_v56 }
 0x379   :  { %v1058_v60 = vrot.slane %v1004_v55, %v1041_v56 }
 0x37a   :  { %v1113_v42 = vsel %vm310_vm4, %v1090_v39, %v1112_v45 }
 0x37b   :  { %v1007_v24 = vpop.permute.xlu1 %1006  ;;  %v1106_v43 = vsel %vm310_vm4, %v1058_v60, %v1105_v63 }
 0x37c   :  { %v1031_v11 = vpop.permute.xlu0 %1030  ;;  %v1062_v49 = vrot.slane %v1007_v24, %v1041_v56 }
 0x37d   :  { %v1094_v51 = vrot.slane %v1031_v11, %v1041_v56 }
 0x37e   :  { %v1107_v12 = vsel %vm312_vm5, %v1062_v49, %v1106_v43 }
 0x37f   :  { %v1034_v2 = vpop.permute.xlu1 %1033  ;;  %v1114_v17 = vsel %vm312_vm5, %v1094_v51, %v1113_v42 }
 0x380   :  { %v1010_v8 = vpop.permute.xlu0 %1009  ;;  %v1098_v62 = vrot.slane %v1034_v2, %v1041_v56 }
 0x381   :  { %v1066_v57 = vrot.slane %v1010_v8, %v1041_v56 }
 0x382   :  { %v1115_v58 = vsel %vm314_vm6, %v1098_v62, %v1114_v17 }
 0x383   :  { %v1013_v1 = vpop.permute.xlu1 %1012  ;;  %v1108_v7 = vsel %vm314_vm6, %v1066_v57, %v1107_v12 }
 0x384   :  { %v1070_v19 = vrot.slane %v1013_v1, %v1041_v56  ;;  %v1037_v10 = vpop.permute.xlu0 %1036 }
 0x385   :  { %v1102_v54 = vrot.slane %v1037_v10, %v1041_v56 }
 0x386   :  { %v1109_v4 = vsel %vm316_vm7, %v1070_v19, %v1108_v7 }
 0x387   :  { %v1116_v22 = vsel %vm316_vm7, %v1102_v54, %v1115_v58  ;;  %v1119_v13 = vsel %vm327_vm8, %v964_v14, %v1109_v4 }
 0x388   :  { %v1120_v16 = vsel %vm327_vm8, %v971_v44, %v1116_v22  ;;  %v1122_v20 = vsel %vm1121_vm9, %v1119_v13, 0.0 }
 0x389   :  { %v1123_v27 = vsel %vm1121_vm9, %v1120_v16, 0.0  ;;  %1124 = vst [vmem:[#allocation8] sm:$0xff] %v1122_v20 }
 0x38a   :  { %1125 = vst [vmem:[#allocation8 + $0x8] sm:$0xff] %v1123_v27 }
 0x38b   :  { %1275 = shalt.err (!%p1272_p6)
}
 0x38c   :  { %s1276_s15 = scalar_lea.hbm %s1821_s3, 256 }
 0x38d   :  { %p1277_p7 = scmp.ne.s32.totalorder %s1821_s3, %s1276_s15  ;;  %p1280_p8 = scmp.lt.u32.totalorder %s1276_s15, %s1821_s3 }
 0x38f   :  { %p1282_p9 = pnand %p1280_p8, %p1277_p7 }
 0x391   :  { %1285 = shalt.err (!%p1282_p9)
}
 0x392   :  { %1137 = dma.vmem_to_hbm [thread:$0]  %s1132_s11, 256, %s1821_s3, [#allocation5], %s1293_s22, %s1293_s22, %s1294_s23  }
 0x393   :  { %1290 = dma.done.wait [#allocation5], 256  }
 0x394   :  { %1291 = vsyncadd [#allocation5], 4294967040 }
 0x395   :  { %1141 = vsyncpa [#allocation4], 1 }
 0x396   :  { %1142 = vsyncpa [#allocation7], 1 }
 0x397   :  { %1143 = vsyncpa [#allocation5], 1 }

</bundles_post_ra>
